<compile_context>
chip_gen: v7x
topology: tpu7x:2x2x1
jax: 0.10.0
libtpu: 0.0.40
codegen_flags: <defaults>
</compile_context>

<pallas_src>
import functools

import jax
import jax.numpy as jnp
from jax.experimental import pallas as pl
from jax.experimental.pallas import tpu as pltpu

LEAKY_SLOPE = 0.01              # torch.nn.LeakyReLU default negative_slope
IN_FEATURES = 28 * 28           # 784
PADDED_FEATURES = 896           # 7 * 128, lane-aligned


def _leaky_relu(x):
    return jnp.where(x > 0, x, LEAKY_SLOPE * x)


def vae_kernel(
    x_ref, eps_ref,
    w1_ref, b1_ref, w2_ref, b2_ref,          # encoder
    wms_ref, bms_ref,                        # fused mean|std head
    wd1_ref, bd1_ref, wd2_ref, bd2_ref, wd3_ref, bd3_ref,  # decoder
    recon_ref, meanstd_ref,
):
    latent = eps_ref.shape[-1]

    x = x_ref[...]                                            # (TB, 896) bf16

    # --- encoder (bf16 MXU matmuls, f32 accumulate, f32 elementwise) ---
    h = jnp.dot(x, w1_ref[...], preferred_element_type=jnp.float32) + b1_ref[...]
    h = _leaky_relu(h)                                        # (TB, 128) f32
    h = jnp.dot(h.astype(jnp.bfloat16), w2_ref[...],
                preferred_element_type=jnp.float32) + b2_ref[...]
    h = _leaky_relu(h)                                        # (TB, 64) f32

    # --- fused latent heads: one (64, 2*latent) matmul ---
    ms = jnp.dot(h.astype(jnp.bfloat16), wms_ref[...],
                 preferred_element_type=jnp.float32) + bms_ref[...]  # (TB, 2L)
    mean = ms[:, :latent]
    std = ms[:, latent:]

    # --- reparametrization trick: z = mean + eps * std ---
    z = mean + eps_ref[...] * std                             # (TB, latent)

    # --- decoder ---
    d = jnp.dot(z.astype(jnp.bfloat16), wd1_ref[...],
                preferred_element_type=jnp.float32) + bd1_ref[...]
    d = _leaky_relu(d)                                        # (TB, 64)
    d = jnp.dot(d.astype(jnp.bfloat16), wd2_ref[...],
                preferred_element_type=jnp.float32) + bd2_ref[...]
    d = _leaky_relu(d)                                        # (TB, 128)
    d = jnp.dot(d.astype(jnp.bfloat16), wd3_ref[...],
                preferred_element_type=jnp.float32) + bd3_ref[...]   # (TB, 896)

    recon_ref[...] = jnp.tanh(d)
    meanstd_ref[...] = ms


def init_linear(key, fan_in, fan_out):
    """PyTorch-style uniform(-1/sqrt(fan_in), 1/sqrt(fan_in)) init."""
    kw, kb = jax.random.split(key)
    bound = 1.0 / (fan_in ** 0.5)
    # Stored as (in, out) so the kernel does x @ W.
    w = jax.random.uniform(kw, (fan_in, fan_out), jnp.float32, -bound, bound)
    b = jax.random.uniform(kb, (1, fan_out), jnp.float32, -bound, bound)
    return w, b


def init_vae_params(key, latent_size=16):
    keys = jax.random.split(key, 7)
    w1, b1 = init_linear(keys[0], IN_FEATURES, 128)
    w2, b2 = init_linear(keys[1], 128, 64)
    wm, bm = init_linear(keys[2], 64, latent_size)
    ws, bs = init_linear(keys[3], 64, latent_size)
    wd1, bd1 = init_linear(keys[4], latent_size, 64)
    wd2, bd2 = init_linear(keys[5], 64, 128)
    wd3, bd3 = init_linear(keys[6], 128, IN_FEATURES)
    return (w1, b1, w2, b2, wm, bm, ws, bs, wd1, bd1, wd2, bd2, wd3, bd3)


def _round_up(x, m):
    return (x + m - 1) // m * m


@functools.partial(jax.jit, static_argnames=("latent_size", "batch_tile"))
def vae_forward(x_nchw, eps, params, latent_size=16, batch_tile=256):
    """x_nchw: (B, 1, 28, 28) f32; eps: (B, latent_size) f32 (stand-in for randn_like)."""
    B = x_nchw.shape[0]
    (w1, b1, w2, b2, wm, bm, ws, bs, wd1, bd1, wd2, bd2, wd3, bd3) = params

    pad_f = PADDED_FEATURES - IN_FEATURES

    # torch.flatten(inputs, start_dim=1), lane-pad 784 -> 896.
    x_flat = x_nchw.reshape(B, IN_FEATURES)
    x_pad = jnp.pad(x_flat, ((0, 0), (0, pad_f)))
    w1_pad = jnp.pad(w1, ((0, pad_f), (0, 0)))        # pad K dim with zeros
    wd3_pad = jnp.pad(wd3, ((0, 0), (0, pad_f)))      # pad N dim with zeros
    bd3_pad = jnp.pad(bd3, ((0, 0), (0, pad_f)))

    # Fuse mean/std heads into one matmul.
    wms = jnp.concatenate([wm, ws], axis=1)           # (64, 2*latent)
    bms = jnp.concatenate([bm, bs], axis=1)           # (1, 2*latent)

    # Batch tile (multiple of 8 sublanes; 256 fills the MXU M dim on v6e/v7x).
    if B >= batch_tile:
        tb = batch_tile
    else:
        tb = _round_up(max(B, 1), 8)
    b_pad = _round_up(B, tb)

    x_pad = jnp.pad(x_pad, ((0, b_pad - B), (0, 0))).astype(jnp.bfloat16)
    eps_pad = jnp.pad(eps, ((0, b_pad - B), (0, 0))).astype(jnp.float32)

    bf16 = lambda a: a.astype(jnp.bfloat16)
    weights = (bf16(w1_pad), b1, bf16(w2), b2, bf16(wms), bms,
               bf16(wd1), bd1, bf16(wd2), bd2, bf16(wd3_pad), bd3_pad)

    def row_spec(cols):
        return pl.BlockSpec((tb, cols), lambda i: (i, 0))

    def const_spec(shape):
        return pl.BlockSpec(shape, lambda i: (0, 0))   # resident across grid

    in_specs = [row_spec(PADDED_FEATURES), row_spec(latent_size)]
    in_specs += [const_spec(w.shape) for w in weights]

    recon_pad, meanstd = pl.pallas_call(
        vae_kernel,
        out_shape=(
            jax.ShapeDtypeStruct((b_pad, PADDED_FEATURES), jnp.float32),
            jax.ShapeDtypeStruct((b_pad, 2 * latent_size), jnp.float32),
        ),
        grid=(b_pad // tb,),
        in_specs=in_specs,
        out_specs=(row_spec(PADDED_FEATURES), row_spec(2 * latent_size)),
        compiler_params=pltpu.CompilerParams(
            dimension_semantics=("parallel",)),
    )(x_pad, eps_pad, *weights)

    recon = recon_pad[:B, :IN_FEATURES].reshape(B, 1, 28, 28)  # view(-1,1,28,28)
    mean = meanstd[:B, :latent_size]
    std = meanstd[:B, latent_size:]
    return recon, mean, std


if __name__ == "__main__":
    B = 2
    LATENT = 16

    key = jax.random.PRNGKey(0)
    k_params, k_x, k_eps = jax.random.split(key, 3)

    params = init_vae_params(k_params, latent_size=LATENT)
    x = jax.random.normal(k_x, (B, 1, 28, 28), jnp.float32)
    # Deterministic stand-in for torch.randn_like(std) in reparametrization_trick.
    eps = jax.random.normal(k_eps, (B, LATENT), jnp.float32)

    recon, mean, std = vae_forward(x, eps, params, latent_size=LATENT)
    jax.block_until_ready((recon, mean, std))

    assert recon.shape == (B, 1, 28, 28)
    assert mean.shape == (B, LATENT)
    assert std.shape == (B, LATENT)
    assert bool(jnp.all(jnp.isfinite(recon)))
    assert bool(jnp.all(jnp.abs(recon) <= 1.0))  # tanh-bounded, as in the reference
    print("KERNEL_OK")
</pallas_src>

<mosaic_0001>
module attributes {stable_mosaic.version = 11 : i64} {
  func.func @vae_kernel(%arg0: i32, %arg1: memref<8x896xbf16, #tpu.memory_space<vmem>>, %arg2: memref<8x16xf32, #tpu.memory_space<vmem>>, %arg3: memref<896x128xbf16, #tpu.memory_space<vmem>>, %arg4: memref<1x128xf32, #tpu.memory_space<vmem>>, %arg5: memref<128x64xbf16, #tpu.memory_space<vmem>>, %arg6: memref<1x64xf32, #tpu.memory_space<vmem>>, %arg7: memref<64x32xbf16, #tpu.memory_space<vmem>>, %arg8: memref<1x32xf32, #tpu.memory_space<vmem>>, %arg9: memref<16x64xbf16, #tpu.memory_space<vmem>>, %arg10: memref<1x64xf32, #tpu.memory_space<vmem>>, %arg11: memref<64x128xbf16, #tpu.memory_space<vmem>>, %arg12: memref<1x128xf32, #tpu.memory_space<vmem>>, %arg13: memref<128x896xbf16, #tpu.memory_space<vmem>>, %arg14: memref<1x896xf32, #tpu.memory_space<vmem>>, %arg15: memref<8x896xf32, #tpu.memory_space<vmem>>, %arg16: memref<8x32xf32, #tpu.memory_space<vmem>>) attributes {dimension_semantics = [#tpu.dimension_semantics<parallel>], iteration_bounds = array<i64: 1>, scalar_prefetch = 0 : i64, scratch_operands = 0 : i64, tpu.core_type = #tpu.core_type<tc>, window_params = [{transform_indices = @transform_0, window_bounds = array<i64: 8, 896>}, {transform_indices = @transform_1, window_bounds = array<i64: 8, 16>}, {pipeline_mode = #tpu.pipeline_mode<synchronous>, transform_indices = @transform_2, window_bounds = array<i64: 896, 128>}, {pipeline_mode = #tpu.pipeline_mode<synchronous>, transform_indices = @transform_3, window_bounds = array<i64: 1, 128>}, {pipeline_mode = #tpu.pipeline_mode<synchronous>, transform_indices = @transform_4, window_bounds = array<i64: 128, 64>}, {pipeline_mode = #tpu.pipeline_mode<synchronous>, transform_indices = @transform_5, window_bounds = array<i64: 1, 64>}, {pipeline_mode = #tpu.pipeline_mode<synchronous>, transform_indices = @transform_6, window_bounds = array<i64: 64, 32>}, {pipeline_mode = #tpu.pipeline_mode<synchronous>, transform_indices = @transform_7, window_bounds = array<i64: 1, 32>}, {pipeline_mode = #tpu.pipeline_mode<synchronous>, transform_indices = @transform_8, window_bounds = array<i64: 16, 64>}, {pipeline_mode = #tpu.pipeline_mode<synchronous>, transform_indices = @transform_9, window_bounds = array<i64: 1, 64>}, {pipeline_mode = #tpu.pipeline_mode<synchronous>, transform_indices = @transform_10, window_bounds = array<i64: 64, 128>}, {pipeline_mode = #tpu.pipeline_mode<synchronous>, transform_indices = @transform_11, window_bounds = array<i64: 1, 128>}, {pipeline_mode = #tpu.pipeline_mode<synchronous>, transform_indices = @transform_12, window_bounds = array<i64: 128, 896>}, {pipeline_mode = #tpu.pipeline_mode<synchronous>, transform_indices = @transform_13, window_bounds = array<i64: 1, 896>}, {transform_indices = @transform_14, window_bounds = array<i64: 8, 896>}, {transform_indices = @transform_15, window_bounds = array<i64: 8, 32>}]} {
    %c0 = arith.constant 0 : index
    %c0_0 = arith.constant 0 : index
    %0 = vector.load %arg1[%c0, %c0_0] : memref<8x896xbf16, #tpu.memory_space<vmem>>, vector<8x896xbf16>
    %c0_1 = arith.constant 0 : index
    %c0_2 = arith.constant 0 : index
    %1 = vector.load %arg3[%c0_1, %c0_2] : memref<896x128xbf16, #tpu.memory_space<vmem>>, vector<896x128xbf16>
    %cst = arith.constant dense<0.000000e+00> : vector<8x128xf32>
    %2 = tpu.matmul %0, %1, %cst {dimension_numbers = #tpu.dot_dimension_numbers<[1], [0], [0], [1], [0, 0, 1, 1], [], []>} : vector<8x896xbf16>, vector<896x128xbf16>, vector<8x128xf32> -> vector<8x128xf32>
    %c0_3 = arith.constant 0 : index
    %c0_4 = arith.constant 0 : index
    %3 = vector.load %arg4[%c0_3, %c0_4] : memref<1x128xf32, #tpu.memory_space<vmem>>, vector<1x128xf32>
    %4 = vector.broadcast %3 : vector<1x128xf32> to vector<8x128xf32>
    %5 = arith.addf %2, %4 : vector<8x128xf32>
    %cst_5 = arith.constant 0.000000e+00 : f32
    %6 = vector.broadcast %cst_5 : f32 to vector<8x128xf32>
    %7 = arith.cmpf ogt, %5, %6 : vector<8x128xf32>
    %cst_6 = arith.constant 0.00999999977 : f32
    %8 = vector.broadcast %cst_6 : f32 to vector<8x128xf32>
    %9 = arith.mulf %8, %5 : vector<8x128xf32>
    %10 = arith.select %7, %5, %9 : vector<8x128xi1>, vector<8x128xf32>
    %11 = arith.truncf %10 : vector<8x128xf32> to vector<8x128xbf16>
    %c0_7 = arith.constant 0 : index
    %c0_8 = arith.constant 0 : index
    %12 = vector.load %arg5[%c0_7, %c0_8] : memref<128x64xbf16, #tpu.memory_space<vmem>>, vector<128x64xbf16>
    %cst_9 = arith.constant dense<0.000000e+00> : vector<8x64xf32>
    %13 = tpu.matmul %11, %12, %cst_9 {dimension_numbers = #tpu.dot_dimension_numbers<[1], [0], [0], [1], [0, 0, 1, 1], [], []>} : vector<8x128xbf16>, vector<128x64xbf16>, vector<8x64xf32> -> vector<8x64xf32>
    %c0_10 = arith.constant 0 : index
    %c0_11 = arith.constant 0 : index
    %14 = vector.load %arg6[%c0_10, %c0_11] : memref<1x64xf32, #tpu.memory_space<vmem>>, vector<1x64xf32>
    %15 = vector.broadcast %14 : vector<1x64xf32> to vector<8x64xf32>
    %16 = arith.addf %13, %15 : vector<8x64xf32>
    %cst_12 = arith.constant 0.000000e+00 : f32
    %17 = vector.broadcast %cst_12 : f32 to vector<8x64xf32>
    %18 = arith.cmpf ogt, %16, %17 : vector<8x64xf32>
    %cst_13 = arith.constant 0.00999999977 : f32
    %19 = vector.broadcast %cst_13 : f32 to vector<8x64xf32>
    %20 = arith.mulf %19, %16 : vector<8x64xf32>
    %21 = arith.select %18, %16, %20 : vector<8x64xi1>, vector<8x64xf32>
    %22 = arith.truncf %21 : vector<8x64xf32> to vector<8x64xbf16>
    %c0_14 = arith.constant 0 : index
    %c0_15 = arith.constant 0 : index
    %23 = vector.load %arg7[%c0_14, %c0_15] : memref<64x32xbf16, #tpu.memory_space<vmem>>, vector<64x32xbf16>
    %cst_16 = arith.constant dense<0.000000e+00> : vector<8x32xf32>
    %24 = tpu.matmul %22, %23, %cst_16 {dimension_numbers = #tpu.dot_dimension_numbers<[1], [0], [0], [1], [0, 0, 1, 1], [], []>} : vector<8x64xbf16>, vector<64x32xbf16>, vector<8x32xf32> -> vector<8x32xf32>
    %c0_17 = arith.constant 0 : index
    %c0_18 = arith.constant 0 : index
    %25 = vector.load %arg8[%c0_17, %c0_18] : memref<1x32xf32, #tpu.memory_space<vmem>>, vector<1x32xf32>
    %26 = vector.broadcast %25 : vector<1x32xf32> to vector<8x32xf32>
    %27 = arith.addf %24, %26 : vector<8x32xf32>
    %28 = vector.extract_strided_slice %27 {offsets = [0, 0], sizes = [8, 16], strides = [1, 1]} : vector<8x32xf32> to vector<8x16xf32>
    %29 = vector.extract_strided_slice %27 {offsets = [0, 16], sizes = [8, 16], strides = [1, 1]} : vector<8x32xf32> to vector<8x16xf32>
    %c0_19 = arith.constant 0 : index
    %c0_20 = arith.constant 0 : index
    %30 = vector.load %arg2[%c0_19, %c0_20] : memref<8x16xf32, #tpu.memory_space<vmem>>, vector<8x16xf32>
    %31 = arith.mulf %30, %29 : vector<8x16xf32>
    %32 = arith.addf %28, %31 : vector<8x16xf32>
    %33 = arith.truncf %32 : vector<8x16xf32> to vector<8x16xbf16>
    %c0_21 = arith.constant 0 : index
    %c0_22 = arith.constant 0 : index
    %34 = vector.load %arg9[%c0_21, %c0_22] : memref<16x64xbf16, #tpu.memory_space<vmem>>, vector<16x64xbf16>
    %cst_23 = arith.constant dense<0.000000e+00> : vector<8x64xf32>
    %35 = tpu.matmul %33, %34, %cst_23 {dimension_numbers = #tpu.dot_dimension_numbers<[1], [0], [0], [1], [0, 0, 1, 1], [], []>} : vector<8x16xbf16>, vector<16x64xbf16>, vector<8x64xf32> -> vector<8x64xf32>
    %c0_24 = arith.constant 0 : index
    %c0_25 = arith.constant 0 : index
    %36 = vector.load %arg10[%c0_24, %c0_25] : memref<1x64xf32, #tpu.memory_space<vmem>>, vector<1x64xf32>
    %37 = vector.broadcast %36 : vector<1x64xf32> to vector<8x64xf32>
    %38 = arith.addf %35, %37 : vector<8x64xf32>
    %cst_26 = arith.constant 0.000000e+00 : f32
    %39 = vector.broadcast %cst_26 : f32 to vector<8x64xf32>
    %40 = arith.cmpf ogt, %38, %39 : vector<8x64xf32>
    %cst_27 = arith.constant 0.00999999977 : f32
    %41 = vector.broadcast %cst_27 : f32 to vector<8x64xf32>
    %42 = arith.mulf %41, %38 : vector<8x64xf32>
    %43 = arith.select %40, %38, %42 : vector<8x64xi1>, vector<8x64xf32>
    %44 = arith.truncf %43 : vector<8x64xf32> to vector<8x64xbf16>
    %c0_28 = arith.constant 0 : index
    %c0_29 = arith.constant 0 : index
    %45 = vector.load %arg11[%c0_28, %c0_29] : memref<64x128xbf16, #tpu.memory_space<vmem>>, vector<64x128xbf16>
    %cst_30 = arith.constant dense<0.000000e+00> : vector<8x128xf32>
    %46 = tpu.matmul %44, %45, %cst_30 {dimension_numbers = #tpu.dot_dimension_numbers<[1], [0], [0], [1], [0, 0, 1, 1], [], []>} : vector<8x64xbf16>, vector<64x128xbf16>, vector<8x128xf32> -> vector<8x128xf32>
    %c0_31 = arith.constant 0 : index
    %c0_32 = arith.constant 0 : index
    %47 = vector.load %arg12[%c0_31, %c0_32] : memref<1x128xf32, #tpu.memory_space<vmem>>, vector<1x128xf32>
    %48 = vector.broadcast %47 : vector<1x128xf32> to vector<8x128xf32>
    %49 = arith.addf %46, %48 : vector<8x128xf32>
    %cst_33 = arith.constant 0.000000e+00 : f32
    %50 = vector.broadcast %cst_33 : f32 to vector<8x128xf32>
    %51 = arith.cmpf ogt, %49, %50 : vector<8x128xf32>
    %cst_34 = arith.constant 0.00999999977 : f32
    %52 = vector.broadcast %cst_34 : f32 to vector<8x128xf32>
    %53 = arith.mulf %52, %49 : vector<8x128xf32>
    %54 = arith.select %51, %49, %53 : vector<8x128xi1>, vector<8x128xf32>
    %55 = arith.truncf %54 : vector<8x128xf32> to vector<8x128xbf16>
    %c0_35 = arith.constant 0 : index
    %c0_36 = arith.constant 0 : index
    %56 = vector.load %arg13[%c0_35, %c0_36] : memref<128x896xbf16, #tpu.memory_space<vmem>>, vector<128x896xbf16>
    %cst_37 = arith.constant dense<0.000000e+00> : vector<8x896xf32>
    %57 = tpu.matmul %55, %56, %cst_37 {dimension_numbers = #tpu.dot_dimension_numbers<[1], [0], [0], [1], [0, 0, 1, 1], [], []>} : vector<8x128xbf16>, vector<128x896xbf16>, vector<8x896xf32> -> vector<8x896xf32>
    %c0_38 = arith.constant 0 : index
    %c0_39 = arith.constant 0 : index
    %58 = vector.load %arg14[%c0_38, %c0_39] : memref<1x896xf32, #tpu.memory_space<vmem>>, vector<1x896xf32>
    %59 = vector.broadcast %58 : vector<1x896xf32> to vector<8x896xf32>
    %60 = arith.addf %57, %59 : vector<8x896xf32>
    %61 = math.tanh %60 : vector<8x896xf32>
    %c0_40 = arith.constant 0 : index
    %c0_41 = arith.constant 0 : index
    %62 = vector.load %arg15[%c0_40, %c0_41] : memref<8x896xf32, #tpu.memory_space<vmem>>, vector<8x896xf32>
    tpu.vector_store %arg15[%c0_40, %c0_41], %61 {strides = array<i32>} : memref<8x896xf32, #tpu.memory_space<vmem>>, vector<8x896xf32>,
    %c0_42 = arith.constant 0 : index
    %c0_43 = arith.constant 0 : index
    %63 = vector.load %arg16[%c0_42, %c0_43] : memref<8x32xf32, #tpu.memory_space<vmem>>, vector<8x32xf32>
    tpu.vector_store %arg16[%c0_42, %c0_43], %27 {strides = array<i32>} : memref<8x32xf32, #tpu.memory_space<vmem>>, vector<8x32xf32>,
    return
  }
  func.func @transform_0(%arg0: i32) -> (i32, i32) {
    %c0_i32 = arith.constant 0 : i32
    %c0_i32_0 = arith.constant 0 : i32
    return %arg0, %c0_i32 : i32, i32
  }
  func.func @transform_1(%arg0: i32) -> (i32, i32) {
    %c0_i32 = arith.constant 0 : i32
    %c0_i32_0 = arith.constant 0 : i32
    return %arg0, %c0_i32 : i32, i32
  }
  func.func @transform_2(%arg0: i32) -> (i32, i32) {
    %c0_i32 = arith.constant 0 : i32
    %c0_i32_0 = arith.constant 0 : i32
    %c0_i32_1 = arith.constant 0 : i32
    return %c0_i32, %c0_i32_0 : i32, i32
  }
  func.func @transform_3(%arg0: i32) -> (i32, i32) {
    %c0_i32 = arith.constant 0 : i32
    %c0_i32_0 = arith.constant 0 : i32
    %c0_i32_1 = arith.constant 0 : i32
    return %c0_i32, %c0_i32_0 : i32, i32
  }
  func.func @transform_4(%arg0: i32) -> (i32, i32) {
    %c0_i32 = arith.constant 0 : i32
    %c0_i32_0 = arith.constant 0 : i32
    %c0_i32_1 = arith.constant 0 : i32
    return %c0_i32, %c0_i32_0 : i32, i32
  }
  func.func @transform_5(%arg0: i32) -> (i32, i32) {
    %c0_i32 = arith.constant 0 : i32
    %c0_i32_0 = arith.constant 0 : i32
    %c0_i32_1 = arith.constant 0 : i32
    return %c0_i32, %c0_i32_0 : i32, i32
  }
  func.func @transform_6(%arg0: i32) -> (i32, i32) {
    %c0_i32 = arith.constant 0 : i32
    %c0_i32_0 = arith.constant 0 : i32
    %c0_i32_1 = arith.constant 0 : i32
    return %c0_i32, %c0_i32_0 : i32, i32
  }
  func.func @transform_7(%arg0: i32) -> (i32, i32) {
    %c0_i32 = arith.constant 0 : i32
    %c0_i32_0 = arith.constant 0 : i32
    %c0_i32_1 = arith.constant 0 : i32
    return %c0_i32, %c0_i32_0 : i32, i32
  }
  func.func @transform_8(%arg0: i32) -> (i32, i32) {
    %c0_i32 = arith.constant 0 : i32
    %c0_i32_0 = arith.constant 0 : i32
    %c0_i32_1 = arith.constant 0 : i32
    return %c0_i32, %c0_i32_0 : i32, i32
  }
  func.func @transform_9(%arg0: i32) -> (i32, i32) {
    %c0_i32 = arith.constant 0 : i32
    %c0_i32_0 = arith.constant 0 : i32
    %c0_i32_1 = arith.constant 0 : i32
    return %c0_i32, %c0_i32_0 : i32, i32
  }
  func.func @transform_10(%arg0: i32) -> (i32, i32) {
    %c0_i32 = arith.constant 0 : i32
    %c0_i32_0 = arith.constant 0 : i32
    %c0_i32_1 = arith.constant 0 : i32
    return %c0_i32, %c0_i32_0 : i32, i32
  }
  func.func @transform_11(%arg0: i32) -> (i32, i32) {
    %c0_i32 = arith.constant 0 : i32
    %c0_i32_0 = arith.constant 0 : i32
    %c0_i32_1 = arith.constant 0 : i32
    return %c0_i32, %c0_i32_0 : i32, i32
  }
  func.func @transform_12(%arg0: i32) -> (i32, i32) {
    %c0_i32 = arith.constant 0 : i32
    %c0_i32_0 = arith.constant 0 : i32
    %c0_i32_1 = arith.constant 0 : i32
    return %c0_i32, %c0_i32_0 : i32, i32
  }
  func.func @transform_13(%arg0: i32) -> (i32, i32) {
    %c0_i32 = arith.constant 0 : i32
    %c0_i32_0 = arith.constant 0 : i32
    %c0_i32_1 = arith.constant 0 : i32
    return %c0_i32, %c0_i32_0 : i32, i32
  }
  func.func @transform_14(%arg0: i32) -> (i32, i32) {
    %c0_i32 = arith.constant 0 : i32
    %c0_i32_0 = arith.constant 0 : i32
    return %arg0, %c0_i32 : i32, i32
  }
  func.func @transform_15(%arg0: i32) -> (i32, i32) {
    %c0_i32 = arith.constant 0 : i32
    %c0_i32_0 = arith.constant 0 : i32
    return %arg0, %c0_i32 : i32, i32
  }
}

</mosaic_0001>

<bundles_post_ra>
// kernel: vae_forward.1
= control target key start
LH: loop header
LB: loop body
LE: loop exit
PB: predicated region body
PF: predicated region fallthrough
CT: control target
= control target key end

     0   :  { %v2146_v42 = vmov 0.0   ;;  %vm2147_vm0 = vmmov 0   ;;  %vm852_vm3 = vcmask 523264   ;;  %vm1619_vm4 = vcmask 261120   ;;  %s2148_s29 = smov 112   ;;  %s2721_s2 = inlined_call_operand.vmem [shape: bf16[896,128], index: 2, kind: input, shape index: {}]   ;;  %s2722_s0 = inlined_call_operand.vmem [shape: bf16[8,896], index: 0, kind: input, shape index: {}]   ;;  %s2723_s4 = inlined_call_operand.vmem [shape: bf16[128,64], index: 4, kind: input, shape index: {}]   ;;  %s2724_s6 = inlined_call_operand.vmem [shape: bf16[64,32], index: 6, kind: input, shape index: {}]   ;;  %s2725_s3 = inlined_call_operand.vmem [shape: f32[1,128], index: 3, kind: input, shape index: {}]   ;;  %s2726_s5 = inlined_call_operand.vmem [shape: f32[1,64], index: 5, kind: input, shape index: {}]   ;;  %s2727_s8 = inlined_call_operand.vmem [shape: bf16[16,64], index: 8, kind: input, shape index: {}]   ;;  %s2728_s7 = inlined_call_operand.vmem [shape: f32[1,32], index: 7, kind: input, shape index: {}]   ;;  %s2729_s10 = inlined_call_operand.vmem [shape: bf16[64,128], index: 10, kind: input, shape index: {}]   ;;  %s2730_s15 = inlined_call_operand.vmem [shape: f32[8,32], index: 15, kind: output, shape index: {1}]   ;;  %s2731_s1 = inlined_call_operand.vmem [shape: f32[8,16], index: 1, kind: input, shape index: {}]   ;;  %s2732_s12 = inlined_call_operand.vmem [shape: bf16[128,896], index: 12, kind: input, shape index: {}]   ;;  %s2733_s9 = inlined_call_operand.vmem [shape: f32[1,64], index: 9, kind: input, shape index: {}]   ;;  %s2734_s11 = inlined_call_operand.vmem [shape: f32[1,128], index: 11, kind: input, shape index: {}]   ;;  %s2735_s13 = inlined_call_operand.vmem [shape: f32[1,896], index: 13, kind: input, shape index: {}]   ;;  %s2736_s14 = inlined_call_operand.vmem [shape: f32[8,896], index: 14, kind: output, shape index: {0}]  }
   0x1   :  { %v1972_v0 = vld [vmem:[%s2721_s2 + $0x40] sm:$0xff]   ;;  %v1976_v4 = vld [vmem:[%s2721_s2 + $0x48] sm:$0xff]   ;;  %v1980_v8 = vld [vmem:[%s2721_s2 + $0x50] sm:$0xff]   ;;  %vm919_vm5 = vcmask 130048  }
   0x2   :  { %v1973_v1 = vld [vmem:[%s2721_s2] sm:$0xff]   ;;  %1773 = vmatprep.subr.bf16.mxu0 %v1972_v0  ;;  %v1977_v5 = vld [vmem:[%s2721_s2 + $0x8] sm:$0xff]   ;;  %v1981_v9 = vld [vmem:[%s2721_s2 + $0x10] sm:$0xff]  }
   0x3   :  { %v1974_v2 = vld [vmem:[%s2721_s2 + $0xc0] sm:$0xff]   ;;  %1774 = vmatpush3.bf16.msra.mxu0 %v1973_v1  ;;  %v1978_v6 = vld [vmem:[%s2721_s2 + $0xc8] sm:$0xff]   ;;  %v1982_v10 = vld [vmem:[%s2721_s2 + $0xd0] sm:$0xff]  }
   0x4   :  { %v1975_v3 = vld [vmem:[%s2721_s2 + $0x80] sm:$0xff]   ;;  %1795 = vmatprep.subr.bf16.mxu1 %v1974_v2  ;;  %1775 = vmatprep.subr.bf16.mxu0 %v1976_v4  ;;  %v1979_v7 = vld [vmem:[%s2721_s2 + $0x88] sm:$0xff]   ;;  %v1983_v11 = vld [vmem:[%s2721_s2 + $0x90] sm:$0xff]  }
   0x5   :  { %1796 = vmatpush3.bf16.msra.mxu1 %v1975_v3  ;;  %v1984_v12 = vld [vmem:[%s2721_s2 + $0x58] sm:$0xff]   ;;  %v1988_v16 = vld [vmem:[%s2721_s2 + $0x60] sm:$0xff]   ;;  %v1992_v20 = vld [vmem:[%s2721_s2 + $0x68] sm:$0xff]  }
   0x6   :  { %1797 = vmatprep.subr.bf16.mxu1 %v1978_v6  ;;  %v1985_v13 = vld [vmem:[%s2721_s2 + $0x18] sm:$0xff]   ;;  %v1989_v17 = vld [vmem:[%s2721_s2 + $0x20] sm:$0xff]   ;;  %v1993_v21 = vld [vmem:[%s2721_s2 + $0x28] sm:$0xff]  }
   0x7   :  { %1776 = vmatpush3.bf16.msra.mxu0 %v1977_v5  ;;  %v1986_v14 = vld [vmem:[%s2721_s2 + $0xd8] sm:$0xff]   ;;  %v1990_v18 = vld [vmem:[%s2721_s2 + $0xe0] sm:$0xff]   ;;  %v1994_v22 = vld [vmem:[%s2721_s2 + $0xe8] sm:$0xff]  }
   0x8   :  { %1777 = vmatprep.subr.bf16.mxu0 %v1980_v8  ;;  %v1987_v15 = vld [vmem:[%s2721_s2 + $0x98] sm:$0xff]   ;;  %v1991_v19 = vld [vmem:[%s2721_s2 + $0xa0] sm:$0xff]   ;;  %v1995_v23 = vld [vmem:[%s2721_s2 + $0xa8] sm:$0xff]  }
   0x9   :  { %1798 = vmatpush3.bf16.msra.mxu1 %v1979_v7  ;;  %v1996_v24 = vld [vmem:[%s2721_s2 + $0x70] sm:$0xff]   ;;  %v2000_v28 = vld [vmem:[%s2721_s2 + $0x78] sm:$0xff]   ;;  %v50_v31 = vld [vmem:[%s2722_s0] sm:$0xff] }
   0xa   :  { %1799 = vmatprep.subr.bf16.mxu1 %v1982_v10  ;;  %v1997_v25 = vld [vmem:[%s2721_s2 + $0x30] sm:$0xff]   ;;  %v2001_v29 = vld [vmem:[%s2721_s2 + $0x38] sm:$0xff]   ;;  %v1630_v32 = vcombine.low %v50_v31, %v50_v31  ;;  %v1631_v33 = vcombine.high %v50_v31, %v50_v31  ;;  %v2006_v35 = vld [vmem:[%s2721_s2 + $0x140] sm:$0xff]  }
   0xb   :  { %1778 = vmatpush3.bf16.msra.mxu0 %v1981_v9  ;;  %v1998_v26 = vld [vmem:[%s2721_s2 + $0xf0] sm:$0xff]   ;;  %v2002_v30 = vld [vmem:[%s2721_s2 + $0xf8] sm:$0xff]   ;;  %v51_v36 = vld [vmem:[%s2722_s0 + $0x8] sm:$0xff] }
   0xc   :  { %1779 = vmatprep.subr.bf16.mxu0 %v1984_v12  ;;  %v1999_v27 = vld [vmem:[%s2721_s2 + $0xb0] sm:$0xff]   ;;  %v2005_v34 = vld [vmem:[%s2721_s2 + $0xb8] sm:$0xff]   ;;  %566 = vmatprep.mubr.bf16.mxu0 %v1631_v33  ;;  %v1632_v37 = vcombine.low %v51_v36, %v51_v36  ;;  %v1633_v38 = vcombine.high %v51_v36, %v51_v36  ;;  %v2009_v39 = vld [vmem:[%s2721_s2 + $0x100] sm:$0xff]  }
   0xd   :  { %1800 = vmatpush3.bf16.msra.mxu1 %v1983_v11  ;;  %v2010_v40 = vld [vmem:[%s2721_s2 + $0x180] sm:$0xff]   ;;  %v2011_v41 = vld [vmem:[%s2721_s2 + $0x148] sm:$0xff]   ;;  %v2014_v45 = vld [vmem:[%s2721_s2 + $0x150] sm:$0xff]  }
   0xe   :  { %1801 = vmatprep.subr.bf16.mxu1 %v1986_v14  ;;  %606 = vmatprep.mubr.bf16.mxu1 %v1633_v38  ;;  %v2012_v43 = vld [vmem:[%s2721_s2 + $0x108] sm:$0xff]   ;;  %v2015_v46 = vld [vmem:[%s2721_s2 + $0x110] sm:$0xff]   ;;  %v2017_v48 = vld [vmem:[%s2721_s2 + $0x158] sm:$0xff]  }
   0xf   :  { %1780 = vmatpush3.bf16.msra.mxu0 %v1985_v13  ;;  %v2013_v44 = vld [vmem:[%s2721_s2 + $0x188] sm:$0xff]   ;;  %v2016_v47 = vld [vmem:[%s2721_s2 + $0x190] sm:$0xff]   ;;  %v2018_v49 = vld [vmem:[%s2721_s2 + $0x118] sm:$0xff]  }
  0x10   :  { %1781 = vmatprep.subr.bf16.mxu0 %v1988_v16  ;;  %v2020_v50 = vld [vmem:[%s2721_s2 + $0x160] sm:$0xff]   ;;  %v2019_v51 = vld [vmem:[%s2721_s2 + $0x198] sm:$0xff]   ;;  %v2023_v53 = vld [vmem:[%s2721_s2 + $0x168] sm:$0xff]  }
  0x11   :  { %1802 = vmatpush3.bf16.msra.mxu1 %v1987_v15  ;;  %v2021_v52 = vld [vmem:[%s2721_s2 + $0x120] sm:$0xff]   ;;  %v2024_v55 = vld [vmem:[%s2721_s2 + $0x128] sm:$0xff]   ;;  %v2026_v56 = vld [vmem:[%s2721_s2 + $0x170] sm:$0xff]  }
  0x12   :  { %1803 = vmatprep.subr.bf16.mxu1 %v1990_v18  ;;  %v2022_v54 = vld [vmem:[%s2721_s2 + $0x1a0] sm:$0xff]   ;;  %v2025_v57 = vld [vmem:[%s2721_s2 + $0x1a8] sm:$0xff]   ;;  %v52_v58 = vld [vmem:[%s2722_s0 + $0x10] sm:$0xff] }
  0x13   :  { %1782 = vmatpush3.bf16.msra.mxu0 %v1989_v17  ;;  %v2027_v59 = vld [vmem:[%s2721_s2 + $0x130] sm:$0xff]   ;;  %v1635_v60 = vcombine.high %v52_v58, %v52_v58  ;;  %v2029_v61 = vld [vmem:[%s2721_s2 + $0x178] sm:$0xff]   ;;  %v1634_v1 = vcombine.low %v52_v58, %v52_v58  ;;  %v2035_v3 = vld [vmem:[%s2723_s4] sm:$0xff]  }
  0x14   :  { %1783 = vmatprep.subr.bf16.mxu0 %v1992_v20  ;;  %v2028_v62 = vld [vmem:[%s2721_s2 + $0x1b0] sm:$0xff]   ;;  %v2030_v63 = vld [vmem:[%s2721_s2 + $0x138] sm:$0xff]   ;;  %v2036_v4 = vld [vmem:[%s2723_s4 + $0x8] sm:$0xff]  }
  0x15   :  { %1804 = vmatpush3.bf16.msra.mxu1 %v1991_v19  ;;  %v2033_v0 = vld [vmem:[%s2721_s2 + $0x1b8] sm:$0xff]   ;;  %v2037_v5 = vld [vmem:[%s2723_s4 + $0x10] sm:$0xff]   ;;  %v2039_v7 = vld [vmem:[%s2723_s4 + $0x20] sm:$0xff]  }
  0x16   :  { %1805 = vmatprep.subr.bf16.mxu1 %v1994_v22  ;;  %v2034_v2 = vld [vmem:[%s2722_s0 + $0x18] ss:$0 sps:$4 sm:$0xff]   ;;  %v2040_v8 = vld [vmem:[%s2723_s4 + $0x28] sm:$0xff]   ;;  %v2041_v9 = vld [vmem:[%s2723_s4 + $0x30] sm:$0xff]  }
  0x17   :  { %1784 = vmatpush3.bf16.msra.mxu0 %v1993_v21  ;;  %v2038_v6 = vld [vmem:[%s2723_s4 + $0x18] sm:$0xff]   ;;  %v2043_v11 = vld [vmem:[%s2724_s6] sm:$0xff]   ;;  %v2044_v12 = vld [vmem:[%s2724_s6 + $0x8] sm:$0xff]  }
  0x18   :  { %1785 = vmatprep.subr.bf16.mxu0 %v1996_v24  ;;  %v2042_v10 = vld [vmem:[%s2723_s4 + $0x38] sm:$0xff]   ;;  %v1629_v14 = vld [vmem:[%s2725_s3] ss:$0 sm:$0xff] }
  0x19   :  { %1806 = vmatpush3.bf16.msra.mxu1 %v1995_v23 }
  0x1a   :  { %1807 = vmatprep.subr.bf16.mxu1 %v1998_v26 }
  0x1b   :  { %1786 = vmatpush3.bf16.msra.mxu0 %v1997_v25 }
  0x1c   :  { %1787 = vmatprep.subr.bf16.mxu0 %v2000_v28 }
  0x1d   :  { %1808 = vmatpush3.bf16.msra.mxu1 %v1999_v27 }
  0x1e   :  { %1809 = vmatprep.subr.bf16.mxu1 %v2002_v30 }
  0x1f   :  { %1788 = vmatpush3.bf16.msra.mxu0 %v2001_v29 }
  0x20   :  { %1817 = vmatprep.subr.bf16.mxu0 %v2006_v35 }
  0x21   :  { %1810 = vmatpush3.bf16.msra.mxu1 %v2005_v34 }
  0x22   :  { %567 = vmatmul.mubr.bf16.vlgmr.msra.gmra.mrb[0].mxu0 %v1630_v32  ;;  %1878 = vmatprep.subr.bf16.mxu1 %v2146_v42 }
  0x23   :  { %1818 = vmatpush3.bf16.msra.mxu0 %v2009_v39  ;;  %646 = vmatprep.mubr.bf16.mxu0 %v1635_v60 }
  0x24   :  { %607 = vmatmul.mubr.bf16.vlgmr.msra.gmra.mrb[0].mxu1 %v1632_v37  ;;  %1819 = vmatprep.subr.bf16.mxu0 %v2011_v41  ;;  %v2046_v41 = vld [vmem:[%s2724_s6 + $0x18] sm:$0xff]  }
  0x25   :  { %1879 = vmatpush3.bf16.msra.mxu1 %v2010_v40  ;;  %1894 = vmatprep.mubr.msk.bf16.mxu1 %vm2147_vm0, %v2146_v42  ;;  %v2045_v40 = vld [vmem:[%s2724_s6 + $0x10] sm:$0xff]  }
  0x26   :  { %1880 = vmatprep.subr.bf16.mxu1 %v2146_v42 }
  0x27   :  { %1820 = vmatpush3.bf16.msra.mxu0 %v2012_v43  ;;  %v1693_v43 = vld [vmem:[%s2726_s5] ss:$0 sm:$0xff] }
  0x28   :  { %1821 = vmatprep.subr.bf16.mxu0 %v2014_v45 }
  0x29   :  { %1881 = vmatpush3.bf16.msra.mxu1 %v2013_v44 }
  0x2a   :  { %1882 = vmatprep.subr.bf16.mxu1 %v2146_v42 }
  0x2b   :  { %1822 = vmatpush3.bf16.msra.mxu0 %v2015_v46 }
  0x2c   :  { %1823 = vmatprep.subr.bf16.mxu0 %v2017_v48 }
  0x2d   :  { %1883 = vmatpush3.bf16.msra.mxu1 %v2016_v47 }
  0x2e   :  { %1884 = vmatprep.subr.bf16.mxu1 %v2146_v42 }
  0x2f   :  { %1824 = vmatpush3.bf16.msra.mxu0 %v2018_v49 }
  0x30   :  { %1825 = vmatprep.subr.bf16.mxu0 %v2020_v50 }
  0x31   :  { %1885 = vmatpush3.bf16.msra.mxu1 %v2019_v51 }
  0x32   :  { %1886 = vmatprep.subr.bf16.mxu1 %v2146_v42 }
  0x33   :  { %1826 = vmatpush3.bf16.msra.mxu0 %v2021_v52  ;;  %v2047_v52 = vld [vmem:[%s2727_s8] sm:$0xff]  }
  0x34   :  { %1827 = vmatprep.subr.bf16.mxu0 %v2023_v53  ;;  %v1702_v53 = vld [vmem:[%s2728_s7] ss:$0 sm:$0xff] }
  0x35   :  { %1887 = vmatpush3.bf16.msra.mxu1 %v2022_v54 }
  0x36   :  { %1888 = vmatprep.subr.bf16.mxu1 %v2146_v42 }
  0x37   :  { %1828 = vmatpush3.bf16.msra.mxu0 %v2024_v55 }
  0x38   :  { %1829 = vmatprep.subr.bf16.mxu0 %v2026_v56 }
  0x39   :  { %1889 = vmatpush3.bf16.msra.mxu1 %v2025_v57 }
  0x3a   :  { %1890 = vmatprep.subr.bf16.mxu1 %v2146_v42 }
  0x3b   :  { %1830 = vmatpush3.bf16.msra.mxu0 %v2027_v59  ;;  %v896_v59 = vld [vmem:[%s2731_s1] sm:$0xff] }
  0x3c   :  { %1831 = vmatprep.subr.bf16.mxu0 %v2029_v61 }
  0x3d   :  { %1891 = vmatpush3.bf16.msra.mxu1 %v2028_v62 }
  0x3e   :  { %1892 = vmatprep.subr.bf16.mxu1 %v2146_v42 }
  0x3f   :  { %1832 = vmatpush3.bf16.msra.mxu0 %v2030_v63  ;;  %v2048_v63 = vld [vmem:[%s2729_s10] sm:$0xff]  }
  0x40   :  { %1898 = vmatprep.subr.bf16.mxu0 %v2146_v42 }
  0x41   :  { %1893 = vmatpush3.bf16.msra.mxu1 %v2033_v0 }
  0x42   :  { %647 = vmatmul.mubr.bf16.vlgmr.msra.gmra.mrb[4].mxu0 %v1634_v1  ;;  %1918 = vmatprep.subr.bf16.mxu1 %v2146_v42  ;;  %v2049_v1 = vld [vmem:[%s2729_s10 + $0x8] sm:$0xff]  }
  0x43   :  { %1914 = vmatprep.mubr.msk.bf16.mxu0 %vm2147_vm0, %v2146_v42  ;;  %1899 = vmatpush3.bf16.msra.mxu0 %v2035_v3  ;;  %v2051_v3 = vld [vmem:[%s2729_s10 + $0x18] sm:$0xff]  }
  0x44   :  { %1895 = vmatmul.mubr.bf16.vlgmr.msra.gmra.mrb[4].mxu1 %v2034_v2  ;;  %1900 = vmatprep.subr.bf16.mxu0 %v2146_v42  ;;  %v2050_v2 = vld [vmem:[%s2729_s10 + $0x10] sm:$0xff]  }
  0x45   :  { %1926 = vmatprep.mubr.msk.bf16.mxu1 %vm2147_vm0, %v2146_v42  ;;  %1919 = vmatpush3.bf16.msra.mxu1 %v2043_v11  ;;  %v2072_v11 = vld [vmem:[%s2732_s12 + $0xac] ss:$28 sps:$4 sm:$0xff]  }
  0x46   :  { %1920 = vmatprep.subr.bf16.mxu1 %v2146_v42 }
  0x47   :  { %1901 = vmatpush3.bf16.msra.mxu0 %v2036_v4  ;;  %v2052_v4 = vld [vmem:[%s2732_s12] ss:$28 sps:$4 sm:$0xff]  }
  0x48   :  { %1902 = vmatprep.subr.bf16.mxu0 %v2146_v42 }
  0x49   :  { %1921 = vmatpush3.bf16.msra.mxu1 %v2044_v12  ;;  %v2070_v12 = vld [vmem:[%s2732_s12 + $0xa8] ss:$28 sps:$4 sm:$0xff]  }
  0x4a   :  { %1922 = vmatprep.subr.bf16.mxu1 %v2146_v42 }
  0x4b   :  { %1903 = vmatpush3.bf16.msra.mxu0 %v2037_v5  ;;  %v2054_v5 = vld [vmem:[%s2732_s12 + $0x4] ss:$28 sps:$4 sm:$0xff]  }
  0x4c   :  { %1904 = vmatprep.subr.bf16.mxu0 %v2146_v42 }
  0x4d   :  { %1923 = vmatpush3.bf16.msra.mxu1 %v2045_v40  ;;  %v2091_v40 = vld [vmem:[%s2732_s12 + $0x158] ss:$28 sps:$4 sm:$0xff]  }
  0x4e   :  { %1924 = vmatprep.subr.bf16.mxu1 %v2146_v42 }
  0x4f   :  { %1905 = vmatpush3.bf16.msra.mxu0 %v2038_v6  ;;  %v2057_v6 = vld [vmem:[%s2732_s12 + $0xc] ss:$28 sps:$4 sm:$0xff]  }
  0x50   :  { %1906 = vmatprep.subr.bf16.mxu0 %v2146_v42 }
  0x51   :  { %1925 = vmatpush3.bf16.msra.mxu1 %v2046_v41  ;;  %v2096_v41 = vld [vmem:[%s2732_s12 + $0x18c] ss:$28 sps:$4 sm:$0xff]  }
  0x52   :  { %1930 = vmatprep.subr.bf16.mxu1 %v2146_v42 }
  0x53   :  { %1907 = vmatpush3.bf16.msra.mxu0 %v2039_v7  ;;  %v2060_v7 = vld [vmem:[%s2732_s12 + $0x3c] ss:$28 sps:$4 sm:$0xff]  }
  0x54   :  { %1908 = vmatprep.subr.bf16.mxu0 %v2146_v42 }
  0x57   :  { %1909 = vmatpush3.bf16.msra.mxu0 %v2040_v8  ;;  %v2058_v8 = vld [vmem:[%s2732_s12 + $0x38] ss:$28 sps:$4 sm:$0xff]  }
  0x58   :  { %1910 = vmatprep.subr.bf16.mxu0 %v2146_v42 }
  0x5b   :  { %1911 = vmatpush3.bf16.msra.mxu0 %v2041_v9  ;;  %v2066_v9 = vld [vmem:[%s2732_s12 + $0x74] ss:$28 sps:$4 sm:$0xff]  }
  0x5c   :  { %1912 = vmatprep.subr.bf16.mxu0 %v2146_v42 }
  0x5f   :  { %1913 = vmatpush3.bf16.msra.mxu0 %v2042_v10  ;;  %v2064_v10 = vld [vmem:[%s2732_s12 + $0x70] ss:$28 sps:$4 sm:$0xff]  }
  0x60   :  { %1442 = vmatprep.subr.bf16.mxu0 %v2054_v5  ;;  %v2116_v5 = vld [vmem:[%s2732_s12 + $0xf0] ss:$28 sps:$4 sm:$0xff]  }
  0xf5   :  { %v1789_v13 = vpop.f32.mrb[0].mxu0 }
  0xf6   :  { %v1790_v15 = vpop.f32.mrb[1].mxu0 }
  0xf7   :  { %v1791_v16 = vadd.f32 %v1790_v15, %v1789_v13  ;;  %v1792_v17 = vpop.f32.mrb[2].mxu0  ;;  %v1811_v18 = vpop.f32.mrb[0].mxu1  ;;  %v2078_v13 = vld [vmem:[%s2732_s12 + $0xe4] ss:$28 sps:$4 sm:$0xff]   ;;  %v2084_v15 = vld [vmem:[%s2732_s12 + $0x11c] ss:$28 sps:$4 sm:$0xff]  }
  0xf8   :  { %v1793_v19 = vpop.f32.mrb[3].mxu0  ;;  %v1812_v20 = vpop.f32.mrb[1].mxu1  ;;  %v2090_v17 = vld [vmem:[%s2732_s12 + $0x154] ss:$28 sps:$4 sm:$0xff]  }
  0xf9   :  { %v569_v21 = vadd.f32 %v1791_v16, %v1629_v14  ;;  %v1813_v22 = vadd.f32 %v1812_v20, %v1811_v18  ;;  %v1814_v23 = vpop.f32.mrb[2].mxu1  ;;  %v2076_v14 = vld [vmem:[%s2732_s12 + $0xe0] ss:$28 sps:$4 sm:$0xff]   ;;  %v2082_v16 = vld [vmem:[%s2732_s12 + $0x118] ss:$28 sps:$4 sm:$0xff]  }
  0xfa   :  { %v1815_v24 = vpop.f32.mrb[3].mxu1  ;;  %v2088_v18 = vld [vmem:[%s2732_s12 + $0x150] ss:$28 sps:$4 sm:$0xff]   ;;  %v1708_v19 = vld [vmem:[%s2733_s9] ss:$0 sm:$0xff] }
  0xfb   :  { %v609_v25 = vadd.f32 %v1813_v22, %v569_v21 }
 0x115   :  { %v1833_v26 = vpop.f32.mrb[4].mxu0 }
 0x116   :  { %v1834_v27 = vpop.f32.mrb[5].mxu0 }
 0x117   :  { %v1835_v28 = vadd.f32 %v1834_v27, %v1833_v26  ;;  %v1836_v29 = vpop.f32.mrb[6].mxu0  ;;  %v688_v30 = vpop.f32.mrb[4].mxu1  ;;  %v2055_v27 = vld [vmem:[%s2732_s12 + $0x8] ss:$28 sps:$4 sm:$0xff]  }
 0x118   :  { %v1837_v31 = vpop.f32.mrb[7].mxu0  ;;  %v1896_v32 = vpop.f32.mrb[5].mxu1  ;;  %v2063_v29 = vld [vmem:[%s2732_s12 + $0x44] ss:$28 sps:$4 sm:$0xff]  }
 0x119   :  { %v649_v33 = vadd.f32 %v1835_v28, %v609_v25  ;;  %v691_v34 = vpop.f32.mrb[6].mxu1  ;;  %v2069_v31 = vld [vmem:[%s2732_s12 + $0x7c] ss:$28 sps:$4 sm:$0xff]  }
 0x11a   :  { %v1897_v35 = vpop.f32.mrb[7].mxu1  ;;  %v2067_v32 = vld [vmem:[%s2732_s12 + $0x78] ss:$28 sps:$4 sm:$0xff]   ;;  %v2073_v34 = vld [vmem:[%s2732_s12 + $0xb0] ss:$28 sps:$4 sm:$0xff]  }
 0x11b   :  { %v689_v36 = vadd.f32 %v688_v30, %v649_v33  ;;  %v2061_v30 = vld [vmem:[%s2732_s12 + $0x40] ss:$28 sps:$4 sm:$0xff]   ;;  %v2075_v33 = vld [vmem:[%s2732_s12 + $0xb4] ss:$28 sps:$4 sm:$0xff]   ;;  %v2081_v35 = vld [vmem:[%s2732_s12 + $0xec] ss:$28 sps:$4 sm:$0xff]  }
 0x11d   :  { %vm694_vm1 = vcmp.gt.f32.partialorder %v689_v36, 0.0  ;;  %v695_v37 = vmul.f32 0.01, %v689_v36 }
 0x11f   :  { %v696_v38 = vsel %vm694_vm1, %v689_v36, %v695_v37  ;;  %v2079_v36 = vld [vmem:[%s2732_s12 + $0xe8] ss:$28 sps:$4 sm:$0xff]  }
 0x120   :  { %v697_v39 = vpack.c.bf16 %v696_v38, %v696_v38  ;;  %v2087_v37 = vld [vmem:[%s2732_s12 + $0x124] ss:$28 sps:$4 sm:$0xff]  }
 0x121   :  { %v2085_v38 = vld [vmem:[%s2732_s12 + $0x120] ss:$28 sps:$4 sm:$0xff]  }
 0x122   :  { %1915 = vmatmul.mubr.bf16.vlgmr.msra.gmra.mrb[8].mxu0 %v697_v39  ;;  %v2093_v39 = vld [vmem:[%s2732_s12 + $0x15c] ss:$28 sps:$4 sm:$0xff]  }
 0x123   :  { %1443 = vmatpush1.bf16.msra.mxu0 %v2052_v4  ;;  %v2118_v4 = vld [vmem:[%s2732_s12 + $0xf4] ss:$28 sps:$4 sm:$0xff]  }
 0x124   :  { %1444 = vmatprep.subr.bf16.mxu0 %v2060_v7  ;;  %v2122_v7 = vld [vmem:[%s2732_s12 + $0x12c] ss:$28 sps:$4 sm:$0xff]  }
 0x127   :  { %1445 = vmatpush1.bf16.msra.mxu0 %v2058_v8  ;;  %v2120_v8 = vld [vmem:[%s2732_s12 + $0x128] ss:$28 sps:$4 sm:$0xff]  }
 0x128   :  { %1446 = vmatprep.subr.bf16.mxu0 %v2066_v9  ;;  %v2123_v9 = vld [vmem:[%s2732_s12 + $0x130] ss:$28 sps:$4 sm:$0xff]  }
 0x12b   :  { %1447 = vmatpush1.bf16.msra.mxu0 %v2064_v10  ;;  %v2126_v10 = vld [vmem:[%s2732_s12 + $0x164] ss:$28 sps:$4 sm:$0xff]  }
 0x12c   :  { %1448 = vmatprep.subr.bf16.mxu0 %v2072_v11  ;;  %v2124_v11 = vld [vmem:[%s2732_s12 + $0x160] ss:$28 sps:$4 sm:$0xff]  }
 0x12f   :  { %1449 = vmatpush1.bf16.msra.mxu0 %v2070_v12  ;;  %v2127_v12 = vld [vmem:[%s2732_s12 + $0x168] ss:$28 sps:$4 sm:$0xff]  }
 0x130   :  { %1450 = vmatprep.subr.bf16.mxu0 %v2078_v13  ;;  %v2130_v13 = vld [vmem:[%s2732_s12 + $0x19c] ss:$28 sps:$4 sm:$0xff]  }
 0x133   :  { %1451 = vmatpush1.bf16.msra.mxu0 %v2076_v14  ;;  %v2128_v14 = vld [vmem:[%s2732_s12 + $0x198] ss:$28 sps:$4 sm:$0xff]  }
 0x134   :  { %1452 = vmatprep.subr.bf16.mxu0 %v2084_v15  ;;  %v2131_v15 = vld [vmem:[%s2732_s12 + $0x1a0] ss:$28 sps:$4 sm:$0xff]  }
 0x137   :  { %1453 = vmatpush1.bf16.msra.mxu0 %v2082_v16  ;;  %v1119_v16 = vlaneseq }
 0x138   :  { %1454 = vmatprep.subr.bf16.mxu0 %v2090_v17 }
 0x139   :  { %v1120_v17 = vshrl.u32 %v1119_v16, 7 }
 0x13b   :  { %1455 = vmatpush1.bf16.msra.mxu0 %v2088_v18  ;;  %v1121_v18 = vsub.s32 0, %v1120_v17 }
 0x13c   :  { %1456 = vmatprep.subr.bf16.mxu0 %v2096_v41 }
 0x1f5   :  { %v803_v44 = vpop.f32.mrb[8].mxu0 }
 0x1f6   :  { %v804_v45 = vadd.f32 %v1693_v43, %v803_v44  ;;  %v1916_v46 = vpop.f32.mrb[9].mxu0  ;;  %v2099_v43 = vld [vmem:[%s2732_s12 + $0x194] ss:$28 sps:$4 sm:$0xff]   ;;  %v2094_v44 = vld [vmem:[%s2732_s12 + $0x188] ss:$28 sps:$4 sm:$0xff]  }
 0x1f7   :  { %v806_v47 = vpop.f32.mrb[10].mxu0  ;;  %1457 = vmatpush1.bf16.msra.mxu0 %v2094_v44  ;;  %v2102_v46 = vld [vmem:[%s2732_s12 + $0x14] ss:$28 sps:$4 sm:$0xff]   ;;  %v1145_v44 = vsub.s32 6, %v1120_v17 }
 0x1f8   :  { %vm809_vm2 = vcmp.gt.f32.partialorder %v804_v45, 0.0  ;;  %v810_v48 = vmul.f32 0.01, %v804_v45  ;;  %v1917_v49 = vpop.f32.mrb[11].mxu0  ;;  %v2149_v47 = vmov 0   ;;  %1524 = vmatprep.subr.bf16.mxu0 %v2102_v46 }
 0x1f9   :  { %1474 = vmatprep.mubr.bf16.mxu0 %v2149_v47 }
 0x1fa   :  { %v811_v50 = vsel %vm809_vm2, %v804_v45, %v810_v48  ;;  %v2097_v45 = vld [vmem:[%s2732_s12 + $0x190] ss:$28 sps:$4 sm:$0xff]   ;;  %v1711_v48 = vld [vmem:[%s2734_s11] ss:$0 sm:$0xff] }
 0x1fb   :  { %v812_v51 = vpack.c.bf16 %v811_v50, %v811_v50 }
 0x1fd   :  { %1927 = vmatmul.mubr.msk.bf16.vlgmr.msra.gmra.mrb[8].mxu1 %vm852_vm3, %v812_v51 }
 0x1fe   :  { %1932 = vmatprep.mubr.msk.bf16.mxu1 %vm2147_vm0, %v2146_v42  ;;  %1931 = vmatpush3.bf16.msra.mxu1 %v2047_v52 }
 0x1ff   :  { %1936 = vmatprep.subr.bf16.mxu1 %v2146_v42 }
 0x2d0   :  { %v890_v54 = vpop.f32.mrb[8].mxu1 }
 0x2d1   :  { %v891_v55 = vadd.f32 %v1702_v53, %v890_v54  ;;  %v1928_v56 = vpop.f32.mrb[9].mxu1 }
 0x2d2   :  { %v893_v57 = vpop.f32.mrb[10].mxu1  ;;  %v2100_v56 = vld [vmem:[%s2732_s12 + $0x10] ss:$28 sps:$4 sm:$0xff]  }
 0x2d3   :  { %1620 = vst.msk [vmem:[%s2730_s15] sm:$0xff] %vm1619_vm4, %v891_v55  ;;  %v1929_v58 = vpop.f32.mrb[11].mxu1  ;;  %898 = vrot.lane.b32.xlu0 %v891_v55, %s2148_s29  ;;  %v2103_v57 = vld [vmem:[%s2732_s12 + $0x18] ss:$28 sps:$4 sm:$0xff]  }
 0x345   :  { %v899_v60 = vpop.permute.xlu0 %898 }
 0x346   :  { %v901_v61 = vmul.f32 %v899_v60, %v896_v59  ;;  %v2106_v59 = vld [vmem:[%s2732_s12 + $0x4c] ss:$28 sps:$4 sm:$0xff]  }
 0x347   :  { %v2104_v60 = vld [vmem:[%s2732_s12 + $0x48] ss:$28 sps:$4 sm:$0xff]  }
 0x348   :  { %v902_v62 = vadd.f32 %v901_v61, %v891_v55  ;;  %v2107_v61 = vld [vmem:[%s2732_s12 + $0x50] ss:$28 sps:$4 sm:$0xff]  }
 0x34a   :  { %v903_v0 = vpack.c.bf16 %v902_v62, %v902_v62  ;;  %v2110_v62 = vld [vmem:[%s2732_s12 + $0x84] ss:$28 sps:$4 sm:$0xff]  }
 0x34c   :  { %1933 = vmatmul.mubr.msk.bf16.vlgmr.msra.gmra.mrb[12].mxu1 %vm919_vm5, %v903_v0  ;;  %v2111_v0 = vld [vmem:[%s2732_s12 + $0x88] ss:$28 sps:$4 sm:$0xff]  }
 0x34d   :  { %1937 = vmatpush3.bf16.msra.mxu1 %v2048_v63  ;;  %1944 = vmatprep.mubr.msk.bf16.mxu1 %vm2147_vm0, %v2146_v42  ;;  %v2108_v63 = vld [vmem:[%s2732_s12 + $0x80] ss:$28 sps:$4 sm:$0xff]  }
 0x34e   :  { %1938 = vmatprep.subr.bf16.mxu1 %v2146_v42 }
 0x351   :  { %1939 = vmatpush3.bf16.msra.mxu1 %v2049_v1  ;;  %v2114_v1 = vld [vmem:[%s2732_s12 + $0xbc] ss:$28 sps:$4 sm:$0xff]  }
 0x352   :  { %1940 = vmatprep.subr.bf16.mxu1 %v2146_v42 }
 0x355   :  { %1941 = vmatpush3.bf16.msra.mxu1 %v2050_v2  ;;  %v2112_v2 = vld [vmem:[%s2732_s12 + $0xb8] ss:$28 sps:$4 sm:$0xff]  }
 0x356   :  { %1942 = vmatprep.subr.bf16.mxu1 %v2146_v42 }
 0x359   :  { %1943 = vmatpush3.bf16.msra.mxu1 %v2051_v3  ;;  %v2115_v3 = vld [vmem:[%s2732_s12 + $0xc0] ss:$28 sps:$4 sm:$0xff]  }
 0x35a   :  { %1483 = vmatprep.subr.bf16.mxu1 %v2057_v6  ;;  %v2119_v6 = vld [vmem:[%s2732_s12 + $0xf8] ss:$28 sps:$4 sm:$0xff]  }
 0x41f   :  { %v957_v20 = vpop.f32.mrb[12].mxu1 }
 0x420   :  { %v958_v21 = vadd.f32 %v1708_v19, %v957_v20  ;;  %v1934_v22 = vpop.f32.mrb[13].mxu1  ;;  %v1129_v19 = vsub.s32 2, %v1120_v17  ;;  %v1117_v20 = vld [vmem:[%s2735_s13] sm:$0xff] }
 0x421   :  { %v960_v23 = vpop.f32.mrb[14].mxu1  ;;  %v1133_v22 = vsub.s32 3, %v1120_v17 }
 0x422   :  { %vm963_vm6 = vcmp.gt.f32.partialorder %v958_v21, 0.0  ;;  %v964_v24 = vmul.f32 0.01, %v958_v21  ;;  %v1935_v25 = vpop.f32.mrb[15].mxu1  ;;  %v1122_v23 = vrot.slane %v1117_v20, %v1121_v18 }
 0x424   :  { %v965_v26 = vsel %vm963_vm6, %v958_v21, %v964_v24  ;;  %v1125_v21 = vsub.s32 1, %v1120_v17  ;;  %v1130_v24 = vrot.slane %v1117_v20, %v1129_v19 }
 0x425   :  { %v966_v28 = vpack.c.bf16 %v965_v26, %v965_v26  ;;  %v1134_v26 = vrot.slane %v1117_v20, %v1133_v22 }
 0x426   :  { %v1126_v25 = vrot.slane %v1117_v20, %v1125_v21 }
 0x427   :  { %1945 = vmatmul.mubr.msk.bf16.vlgmr.msra.gmra.mrb[16].mxu1 %vm852_vm3, %v966_v28 }
 0x428   :  { %1484 = vmatpush1.bf16.msra.mxu1 %v2055_v27  ;;  %1515 = vmatprep.mubr.bf16.mxu1 %v2149_v47 }
 0x429   :  { %1485 = vmatprep.subr.bf16.mxu1 %v2063_v29 }
 0x42c   :  { %1486 = vmatpush1.bf16.msra.mxu1 %v2061_v30 }
 0x42d   :  { %1487 = vmatprep.subr.bf16.mxu1 %v2069_v31 }
 0x430   :  { %1488 = vmatpush1.bf16.msra.mxu1 %v2067_v32 }
 0x431   :  { %1489 = vmatprep.subr.bf16.mxu1 %v2075_v33 }
 0x434   :  { %1490 = vmatpush1.bf16.msra.mxu1 %v2073_v34 }
 0x435   :  { %1491 = vmatprep.subr.bf16.mxu1 %v2081_v35 }
 0x438   :  { %1492 = vmatpush1.bf16.msra.mxu1 %v2079_v36 }
 0x439   :  { %1493 = vmatprep.subr.bf16.mxu1 %v2087_v37 }
 0x43c   :  { %1494 = vmatpush1.bf16.msra.mxu1 %v2085_v38 }
 0x43d   :  { %1495 = vmatprep.subr.bf16.mxu1 %v2093_v39 }
 0x440   :  { %1496 = vmatpush1.bf16.msra.mxu1 %v2091_v40 }
 0x441   :  { %1497 = vmatprep.subr.bf16.mxu1 %v2099_v43  ;;  %v1137_v43 = vsub.s32 4, %v1120_v17 }
 0x443   :  { %v1138_v46 = vrot.slane %v1117_v20, %v1137_v43 }
 0x444   :  { %1498 = vmatpush1.bf16.msra.mxu1 %v2097_v45  ;;  %v1141_v45 = vsub.s32 5, %v1120_v17 }
 0x445   :  { %1948 = vmatprep.subr.bf16.mxu1 %v2146_v42 }
 0x4fa   :  { %v1043_v49 = vpop.f32.mrb[16].mxu1 }
 0x4fb   :  { %v1044_v50 = vadd.f32 %v1711_v48, %v1043_v49  ;;  %v1946_v51 = vpop.f32.mrb[17].mxu1  ;;  %v1142_v48 = vrot.slane %v1117_v20, %v1141_v45 }
 0x4fc   :  { %v1046_v52 = vpop.f32.mrb[18].mxu1 }
 0x4fd   :  { %vm1049_vm7 = vcmp.gt.f32.partialorder %v1044_v50, 0.0  ;;  %v1050_v53 = vmul.f32 0.01, %v1044_v50  ;;  %v1947_v54 = vpop.f32.mrb[19].mxu1 }
 0x4ff   :  { %v1051_v55 = vsel %vm1049_vm7, %v1044_v50, %v1050_v53 }
 0x500   :  { %v1052_v58 = vpack.c.bf16 %v1051_v55, %v1051_v55 }
 0x502   :  { %1475 = vmatmul.mubr.bf16.vlgmr.msra.gmra.mrb[12].mxu0 %v1052_v58  ;;  %1516 = vmatmul.mubr.bf16.vlgmr.msra.gmra.mrb[20].mxu1 %v1052_v58 }
 0x503   :  { %1525 = vmatpush1.bf16.msra.mxu0 %v2100_v56  ;;  %1949 = vmatpush3.bf16.msra.mxu1 %v2103_v57 }
 0x504   :  { %1526 = vmatprep.subr.bf16.mxu0 %v2106_v59  ;;  %1950 = vmatprep.subr.bf16.mxu1 %v2146_v42 }
 0x505   :  { %1556 = vmatprep.mubr.bf16.mxu0 %v2149_v47  ;;  %1964 = vmatprep.mubr.msk.bf16.mxu1 %vm2147_vm0, %v2146_v42  ;;  %v1146_v47 = vrot.slane %v1117_v20, %v1145_v44 }
 0x507   :  { %1527 = vmatpush1.bf16.msra.mxu0 %v2104_v60  ;;  %1951 = vmatpush3.bf16.msra.mxu1 %v2107_v61 }
 0x508   :  { %1528 = vmatprep.subr.bf16.mxu0 %v2110_v62  ;;  %1952 = vmatprep.subr.bf16.mxu1 %v2146_v42 }
 0x50b   :  { %1529 = vmatpush1.bf16.msra.mxu0 %v2108_v63  ;;  %1953 = vmatpush3.bf16.msra.mxu1 %v2111_v0 }
 0x50c   :  { %1530 = vmatprep.subr.bf16.mxu0 %v2114_v1  ;;  %1954 = vmatprep.subr.bf16.mxu1 %v2146_v42 }
 0x50f   :  { %1531 = vmatpush1.bf16.msra.mxu0 %v2112_v2  ;;  %1955 = vmatpush3.bf16.msra.mxu1 %v2115_v3 }
 0x510   :  { %1532 = vmatprep.subr.bf16.mxu0 %v2118_v4  ;;  %1956 = vmatprep.subr.bf16.mxu1 %v2146_v42 }
 0x513   :  { %1533 = vmatpush1.bf16.msra.mxu0 %v2116_v5  ;;  %1957 = vmatpush3.bf16.msra.mxu1 %v2119_v6 }
 0x514   :  { %1534 = vmatprep.subr.bf16.mxu0 %v2122_v7  ;;  %1958 = vmatprep.subr.bf16.mxu1 %v2146_v42 }
 0x517   :  { %1535 = vmatpush1.bf16.msra.mxu0 %v2120_v8  ;;  %1959 = vmatpush3.bf16.msra.mxu1 %v2123_v9 }
 0x518   :  { %1536 = vmatprep.subr.bf16.mxu0 %v2126_v10  ;;  %1960 = vmatprep.subr.bf16.mxu1 %v2146_v42 }
 0x51b   :  { %1537 = vmatpush1.bf16.msra.mxu0 %v2124_v11  ;;  %1961 = vmatpush3.bf16.msra.mxu1 %v2127_v12 }
 0x51c   :  { %1538 = vmatprep.subr.bf16.mxu0 %v2130_v13  ;;  %1962 = vmatprep.subr.bf16.mxu1 %v2146_v42 }
 0x51f   :  { %1539 = vmatpush1.bf16.msra.mxu0 %v2128_v14  ;;  %1963 = vmatpush3.bf16.msra.mxu1 %v2131_v15 }
 0x522   :  { %1557 = vmatmul.mubr.bf16.vlgmr.msra.gmra.mrb[16].mxu0 %v1052_v58  ;;  %1965 = vmatmul.mubr.bf16.vlgmr.msra.gmra.mrb[24].mxu1 %v1052_v58 }
 0x5d5   :  { %v1476_v27 = vpop.f32.mrb[12].mxu0  ;;  %v1517_v42 = vpop.f32.mrb[20].mxu1 }
 0x5d6   :  { %v1477_v28 = vadd.f32 %v1476_v27, %v1122_v23  ;;  %v1518_v29 = vadd.f32 %v1517_v42, %v1130_v24  ;;  %v1478_v30 = vpop.f32.mrb[13].mxu0  ;;  %v1519_v31 = vpop.f32.mrb[21].mxu1 }
 0x5d7   :  { %v1479_v32 = vadd.f32 %v1478_v30, %v1126_v25  ;;  %v1520_v33 = vadd.f32 %v1519_v31, %v1134_v26  ;;  %v1480_v34 = vpop.f32.mrb[14].mxu0  ;;  %v1521_v35 = vpop.f32.mrb[22].mxu1 }
 0x5d8   :  { %2132 = vtanh.f32 %v1477_v28  ;;  %v1481_v36 = vpop.f32.mrb[15].mxu0  ;;  %v1522_v37 = vpop.f32.mrb[23].mxu1 }
 0x5d9   :  { %2134 = vtanh.f32 %v1518_v29 }
 0x5da   :  { %2136 = vtanh.f32 %v1479_v32 }
 0x5db   :  { %2138 = vtanh.f32 %v1520_v33 }
 0x5e2   :  { %v2133_v38 = vpop.eup %2132 }
 0x5e3   :  { %v2135_v39 = vpop.eup %2134  ;;  %1612 = vst [vmem:[%s2736_s14] sm:$0xff] %v2133_v38 }
 0x5e4   :  { %v2137_v40 = vpop.eup %2136  ;;  %1614 = vst [vmem:[%s2736_s14 + $0x10] sm:$0xff] %v2135_v39 }
 0x5e5   :  { %v2139_v41 = vpop.eup %2138  ;;  %1613 = vst [vmem:[%s2736_s14 + $0x8] sm:$0xff] %v2137_v40 }
 0x5e6   :  { %1615 = vst [vmem:[%s2736_s14 + $0x18] sm:$0xff] %v2139_v41 }
 0x5f5   :  { %v1558_v49 = vpop.f32.mrb[16].mxu0  ;;  %v1599_v50 = vpop.f32.mrb[24].mxu1 }
 0x5f6   :  { %v1559_v51 = vadd.f32 %v1558_v49, %v1138_v46  ;;  %v1600_v52 = vadd.f32 %v1599_v50, %v1146_v47  ;;  %v1560_v53 = vpop.f32.mrb[17].mxu0  ;;  %v1966_v54 = vpop.f32.mrb[25].mxu1 }
 0x5f7   :  { %v1561_v55 = vadd.f32 %v1560_v53, %v1142_v48  ;;  %v1562_v56 = vpop.f32.mrb[18].mxu0  ;;  %v1602_v57 = vpop.f32.mrb[26].mxu1 }
 0x5f8   :  { %2140 = vtanh.f32 %v1559_v51  ;;  %v1563_v58 = vpop.f32.mrb[19].mxu0  ;;  %v1967_v59 = vpop.f32.mrb[27].mxu1 }
 0x5f9   :  { %2142 = vtanh.f32 %v1600_v52 }
 0x5fa   :  { %2144 = vtanh.f32 %v1561_v55 }
 0x602   :  { %v2141_v60 = vpop.eup %2140 }
 0x603   :  { %v2143_v61 = vpop.eup %2142  ;;  %1616 = vst [vmem:[%s2736_s14 + $0x20] sm:$0xff] %v2141_v60 }
 0x604   :  { %v2145_v62 = vpop.eup %2144  ;;  %1618 = vst [vmem:[%s2736_s14 + $0x30] sm:$0xff] %v2143_v61 }
 0x605   :  { %1617 = vst [vmem:[%s2736_s14 + $0x28] sm:$0xff] %v2145_v62 }

</bundles_post_ra>
